<compile_context>
chip_gen: v7x
topology: tpu7x:2x2x1
jax: 0.10.0
libtpu: 0.0.40
codegen_flags: <defaults>
</compile_context>

<pallas_src>
import functools

import jax
import jax.numpy as jnp
from jax.experimental import pallas as pl
from jax.experimental.pallas import tpu as pltpu


def self_attn_kernel(x_ref, q_ref, k_ref, v_ref, gamma_ref, o_ref, acc_ref, *,
                     sub_chunks):
    """One (batch, q-tile, kv-tile) grid step.

    x_ref : (1, C,  TQ) f32   residual input
    q_ref : (1, C8, TQ) bf16
    k_ref : (1, C8, TK) bf16
    v_ref : (1, C,  TK) bf16
    gamma : (1, 1)      f32 in SMEM
    o_ref : (1, C,  TQ) f32
    acc   : (C, TQ)     f32 VMEM scratch, persistent across the kv (last) grid axis
    """
    kj = pl.program_id(2)

    @pl.when(kj == 0)
    def _init():
        acc_ref[...] = jnp.zeros_like(acc_ref)

    q = q_ref[0]      # (C8, TQ) bf16
    k = k_ref[0]      # (C8, TK) bf16
    v = v_ref[0]      # (C,  TK) bf16

    tk = k.shape[1]
    ck = tk // sub_chunks
    # Statically-unrolled sub-chunks over the KV tile: the EUP sigmoid / bf16 cast of
    # sub-chunk h overlaps the MXU score matmul of sub-chunk h+1.
    for h in range(sub_chunks):
        kh = k[:, h * ck:(h + 1) * ck]                                   # (C8, ck)
        vh = v[:, h * ck:(h + 1) * ck]                                   # (C,  ck)
        # s[j, i] = sum_c k[c, j] * q[c, i]  -> scores indexed [kv, q] (this IS attn.T),
        # so no q.T and no attn.T materialization.
        s = jax.lax.dot_general(kh, q, (((0,), (0,)), ((), ())),
                                preferred_element_type=jnp.float32)      # (ck, TQ) f32
        # sigmoid(x) == 0.5*tanh(0.5*x) + 0.5: one EUP transcendental instead of
        # exp + divide.  Kept f32 (portable to v5e: no bf16 EUP there).
        p = (jnp.tanh(s * 0.5) * 0.5 + 0.5).astype(jnp.bfloat16)         # (ck, TQ) bf16
        # acc[c, i] += sum_j v[c, j] * p[j, i]
        acc_ref[...] += jnp.dot(vh, p, preferred_element_type=jnp.float32)

    @pl.when(kj == pl.num_programs(2) - 1)
    def _finalize():
        gamma = gamma_ref[0, 0]
        o_ref[0] = (gamma * acc_ref[...] + x_ref[0]).astype(o_ref.dtype)


def _round_up(x, m):
    return ((x + m - 1) // m) * m


def _tile_candidates(n, cap):
    """Descending legal tile sizes for an axis of length n: the full axis (if <= cap)
    and every multiple of 128 that divides n and is <= cap."""
    cands = []
    if n <= cap:
        cands.append(n)
    t = (min(cap, n) // 128) * 128
    while t >= 128:
        if n % t == 0 and t not in cands:
            cands.append(t)
        t -= 128
    return cands or [n]


def _vmem_block_bytes(C, C8, tq, tk, sub):
    """Rough VMEM footprint: double-buffered blocks + acc scratch + per-step temps."""
    blocks = 2 * (C * tq * 4      # x residual (f32)
                  + C * tq * 4    # out (f32)
                  + C8 * tq * 2   # q (bf16)
                  + C8 * tk * 2   # k (bf16)
                  + C * tk * 2)   # v (bf16)
    acc = C * tq * 4
    temps = (tk // sub) * tq * 8  # f32 scores + bf16 probs + slack, per sub-chunk
    return blocks + acc + temps


def _plan_tiles(N, B, C, C8):
    """Generation-aware padded length, (TQ, TK), sub-chunk count and vmem limit."""
    try:
        vmem_cap = int(pltpu.get_tpu_info().vmem_capacity_bytes)
    except Exception:
        vmem_cap = 64 * 1024 * 1024   # assume the smallest generation (v7x)

    big_vmem = vmem_cap >= 100 * 1024 * 1024          # v5e / v6e (128 MiB physical)
    tq_cap = 2048 if (big_vmem and C <= 512) else 1024
    tk_cap = 512
    # Leave ~16 MiB headroom for compiler-internal scratch:
    # 64 MiB limit on v5e/v6e, 48 MiB on v7x.
    vmem_limit = min(vmem_cap - 16 * 1024 * 1024, 64 * 1024 * 1024)
    budget = int(vmem_limit * 0.85)

    # Pad N to a multiple of 128 whenever the axis must actually be tiled, so the
    # (8,128) tiling rule never forces whole-axis blocks at large H*W.
    if N <= tk_cap:
        n_pad = N
    else:
        n_pad = N if N % 128 == 0 else _round_up(N, 128)

    tq_cands = _tile_candidates(n_pad, tq_cap)
    tk_cands = _tile_candidates(n_pad, tk_cap)

    tq_sel, tk_sel = tq_cands[-1], tk_cands[-1]
    found = False
    for tq in tq_cands:                 # prefer the largest q-tile (cuts K/V re-streaming)
        for tk in tk_cands:             # then the largest kv-tile that still fits
            sub = 2 if tk % 256 == 0 else 1
            if _vmem_block_bytes(C, C8, tq, tk, sub) <= budget:
                tq_sel, tk_sel = tq, tk
                found = True
                break
        if found:
            break

    # v7x has 2 TensorCores sharded over the parallel grid axes: make sure there are at
    # least 2 parallel grid steps when possible (only relevant for B == 1).
    if (not big_vmem) and B * (n_pad // tq_sel) < 2:
        for tq in tq_cands:
            if n_pad // tq >= 2:
                tq_sel = tq
                break

    sub_chunks = 2 if tk_sel % 256 == 0 else 1
    return n_pad, tq_sel, tk_sel, sub_chunks, vmem_limit


def self_attn_forward(x, wq, bq, wk, bk, wv, bv, gamma):
    """x: (B, C, H, W) float32.  mode='hw' -> N = H*W."""
    B, C, H, W = x.shape
    C8 = wq.shape[0]
    N = H * W

    x_flat = x.reshape(B, C, N).astype(jnp.float32)

    # Fused Q/K/V 1x1-conv projection: ONE batched channel matmul over all B*N columns
    # (x read once; wide output dim 2*C8+C for better MXU column utilization).
    w_qkv = jnp.concatenate([wq, wk, wv], axis=0)        # (2*C8 + C, C)
    b_qkv = jnp.concatenate([bq, bk, bv], axis=0)        # (2*C8 + C,)
    qkv = jnp.einsum('oc,bcn->bon', w_qkv, x_flat) + b_qkv[None, :, None]
    qkv = qkv.astype(jnp.bfloat16)                       # bf16 MXU operands
    q = qkv[:, :C8]                                      # (B, C8, N)
    k = qkv[:, C8:2 * C8]                                # (B, C8, N)
    v = qkv[:, 2 * C8:]                                  # (B, C,  N)

    n_pad, TQ, TK, sub_chunks, vmem_limit = _plan_tiles(N, B, C, C8)

    if n_pad != N:
        pad = ((0, 0), (0, 0), (0, n_pad - N))
        # Zero-padded v columns contribute nothing to the output; padded q/x columns only
        # produce output columns that are sliced off below.
        x_flat = jnp.pad(x_flat, pad)
        q = jnp.pad(q, pad)
        k = jnp.pad(k, pad)
        v = jnp.pad(v, pad)

    gamma2 = gamma.reshape(1, 1).astype(jnp.float32)

    grid = (B, n_pad // TQ, n_pad // TK)
    kernel = functools.partial(self_attn_kernel, sub_chunks=sub_chunks)

    out_flat = pl.pallas_call(
        kernel,
        out_shape=jax.ShapeDtypeStruct((B, C, n_pad), jnp.float32),
        grid_spec=pltpu.PrefetchScalarGridSpec(
            num_scalar_prefetch=0,
            grid=grid,
            in_specs=[
                pl.BlockSpec((1, C, TQ), lambda b, qi, kj: (b, 0, qi)),    # x (residual)
                pl.BlockSpec((1, C8, TQ), lambda b, qi, kj: (b, 0, qi)),   # q
                pl.BlockSpec((1, C8, TK), lambda b, qi, kj: (b, 0, kj)),   # k
                pl.BlockSpec((1, C, TK), lambda b, qi, kj: (b, 0, kj)),    # v
                pl.BlockSpec(memory_space=pltpu.MemorySpace.SMEM),         # gamma scalar
            ],
            out_specs=pl.BlockSpec((1, C, TQ), lambda b, qi, kj: (b, 0, qi)),
            scratch_shapes=[pltpu.VMEM((C, TQ), jnp.float32)],
        ),
        compiler_params=pltpu.CompilerParams(
            dimension_semantics=("parallel", "parallel", "arbitrary"),
            vmem_limit_bytes=vmem_limit,
        ),
        # Write the output into x_flat's buffer (same shape/dtype); XLA inserts a copy
        # if x_flat is still needed elsewhere, so this is safe and saves an HBM buffer.
        input_output_aliases={0: 0},
    )(x_flat, q, k, v, gamma2)

    return out_flat[..., :N].reshape(B, C, H, W)


def reference_forward(x, wq, bq, wk, bk, wv, bv, gamma):
    B, C, H, W = x.shape
    N = H * W
    xf = x.reshape(B, C, N)
    q = jnp.einsum('oc,bcn->bon', wq, xf) + bq[None, :, None]   # (B, C8, N)
    k = jnp.einsum('oc,bcn->bon', wk, xf) + bk[None, :, None]   # (B, C8, N)
    v = jnp.einsum('oc,bcn->bon', wv, xf) + bv[None, :, None]   # (B, C,  N)
    attn = jax.nn.sigmoid(jnp.einsum('bci,bcj->bij', q, k))     # (B, N, N)
    out = jnp.einsum('bcj,bij->bci', v, attn)                   # (B, C, N)
    return (gamma[0] * out + xf).reshape(B, C, H, W)


if __name__ == "__main__":
    # small shapes consistent with the module (in_channels divisible by 8)
    B, C, H, W = 2, 16, 8, 8
    C8 = C // 8

    key = jax.random.PRNGKey(0)
    kx, kwq, kbq, kwk, kbk, kwv, kbv, kg = jax.random.split(key, 8)

    x = jax.random.normal(kx, (B, C, H, W), dtype=jnp.float32)

    # deterministic parameter init (1x1 conv weights as (Cout, Cin) matrices)
    wq = jax.random.normal(kwq, (C8, C), dtype=jnp.float32) * 0.1
    bq = jax.random.normal(kbq, (C8,), dtype=jnp.float32) * 0.1
    wk = jax.random.normal(kwk, (C8, C), dtype=jnp.float32) * 0.1
    bk = jax.random.normal(kbk, (C8,), dtype=jnp.float32) * 0.1
    wv = jax.random.normal(kwv, (C, C), dtype=jnp.float32) * 0.1
    bv = jax.random.normal(kbv, (C,), dtype=jnp.float32) * 0.1
    # nn.Parameter(torch.zeros(1)) in __init__; use a nonzero deterministic value so
    # the attention path is actually exercised in the residual.
    gamma = jnp.array([0.5], dtype=jnp.float32)

    fwd = jax.jit(self_attn_forward)
    out = fwd(x, wq, bq, wk, bk, wv, bv, gamma)
    out = jax.block_until_ready(out)

    ref = reference_forward(x, wq, bq, wk, bk, wv, bv, gamma)
    assert out.shape == (B, C, H, W)
    # bf16 MXU operands (f32 accumulation) -> looser tolerance than a pure-f32 path.
    assert jnp.allclose(out, ref, atol=5e-2, rtol=5e-2), float(jnp.max(jnp.abs(out - ref)))

    print("KERNEL_OK")
</pallas_src>

<mosaic_0001>
module attributes {stable_mosaic.version = 11 : i64} {
  func.func @self_attn_kernel(%arg0: i32, %arg1: i32, %arg2: i32, %arg3: memref<1x16x64xf32, #tpu.memory_space<vmem>>, %arg4: memref<1x2x64xbf16, #tpu.memory_space<vmem>>, %arg5: memref<1x2x64xbf16, #tpu.memory_space<vmem>>, %arg6: memref<1x16x64xbf16, #tpu.memory_space<vmem>>, %arg7: memref<1x1xf32, #tpu.memory_space<smem>>, %arg8: memref<1x16x64xf32, #tpu.memory_space<vmem>>, %arg9: memref<16x64xf32, #tpu.memory_space<vmem>>) attributes {dimension_semantics = [#tpu.dimension_semantics<parallel>, #tpu.dimension_semantics<parallel>, #tpu.dimension_semantics<arbitrary>], iteration_bounds = array<i64: 2, 1, 1>, scalar_prefetch = 0 : i64, scratch_operands = 1 : i64, tpu.core_type = #tpu.core_type<tc>, window_params = [{transform_indices = @transform_0, window_bounds = array<i64: 1, 16, 64>}, {transform_indices = @transform_1, window_bounds = array<i64: 1, 2, 64>}, {transform_indices = @transform_2, window_bounds = array<i64: 1, 2, 64>}, {transform_indices = @transform_3, window_bounds = array<i64: 1, 16, 64>}, {transform_indices = @transform_4, window_bounds = array<i64: 1, 1>}, {transform_indices = @transform_5, window_bounds = array<i64: 1, 16, 64>}]} {
    %c0_i32 = arith.constant 0 : i32
    %0 = arith.cmpi eq, %arg2, %c0_i32 : i32
    %1 = arith.extui %0 : i1 to i32
    %c0_i32_0 = arith.constant 0 : i32
    %2 = arith.cmpi ne, %1, %c0_i32_0 : i32
    scf.if %2 {
      %cst_19 = arith.constant 0.000000e+00 : f32
      %25 = vector.broadcast %cst_19 : f32 to vector<16x64xf32>
      %c0_20 = arith.constant 0 : index
      %c0_21 = arith.constant 0 : index
      %26 = vector.load %arg9[%c0_20, %c0_21] : memref<16x64xf32, #tpu.memory_space<vmem>>, vector<16x64xf32>
      tpu.vector_store %arg9[%c0_20, %c0_21], %25 {strides = array<i32>} : memref<16x64xf32, #tpu.memory_space<vmem>>, vector<16x64xf32>,
    } else {
    }
    %c0 = arith.constant 0 : index
    %c0_1 = arith.constant 0 : index
    %c0_2 = arith.constant 0 : index
    %3 = vector.load %arg4[%c0, %c0_1, %c0_2] : memref<1x2x64xbf16, #tpu.memory_space<vmem>>, vector<1x2x64xbf16>
    %4 = vector.shape_cast %3 : vector<1x2x64xbf16> to vector<2x64xbf16>
    %c0_3 = arith.constant 0 : index
    %c0_4 = arith.constant 0 : index
    %c0_5 = arith.constant 0 : index
    %5 = vector.load %arg5[%c0_3, %c0_4, %c0_5] : memref<1x2x64xbf16, #tpu.memory_space<vmem>>, vector<1x2x64xbf16>
    %6 = vector.shape_cast %5 : vector<1x2x64xbf16> to vector<2x64xbf16>
    %c0_6 = arith.constant 0 : index
    %c0_7 = arith.constant 0 : index
    %c0_8 = arith.constant 0 : index
    %7 = vector.load %arg6[%c0_6, %c0_7, %c0_8] : memref<1x16x64xbf16, #tpu.memory_space<vmem>>, vector<1x16x64xbf16>
    %8 = vector.shape_cast %7 : vector<1x16x64xbf16> to vector<16x64xbf16>
    %cst = arith.constant dense<0.000000e+00> : vector<64x64xf32>
    %9 = tpu.matmul %6, %4, %cst {dimension_numbers = #tpu.dot_dimension_numbers<[0], [0], [1], [1], [0, 1, 1, 1], [], []>} : vector<2x64xbf16>, vector<2x64xbf16>, vector<64x64xf32> -> vector<64x64xf32>
    %cst_9 = arith.constant 5.000000e-01 : f32
    %10 = vector.broadcast %cst_9 : f32 to vector<64x64xf32>
    %11 = arith.mulf %9, %10 : vector<64x64xf32>
    %12 = math.tanh %11 : vector<64x64xf32>
    %cst_10 = arith.constant 5.000000e-01 : f32
    %13 = vector.broadcast %cst_10 : f32 to vector<64x64xf32>
    %14 = arith.mulf %12, %13 : vector<64x64xf32>
    %cst_11 = arith.constant 5.000000e-01 : f32
    %15 = vector.broadcast %cst_11 : f32 to vector<64x64xf32>
    %16 = arith.addf %14, %15 : vector<64x64xf32>
    %17 = arith.truncf %16 : vector<64x64xf32> to vector<64x64xbf16>
    %c0_12 = arith.constant 0 : index
    %c0_13 = arith.constant 0 : index
    %18 = vector.load %arg9[%c0_12, %c0_13] : memref<16x64xf32, #tpu.memory_space<vmem>>, vector<16x64xf32>
    %cst_14 = arith.constant dense<0.000000e+00> : vector<16x64xf32>
    %19 = tpu.matmul %8, %17, %cst_14 {dimension_numbers = #tpu.dot_dimension_numbers<[1], [0], [0], [1], [0, 0, 1, 1], [], []>} : vector<16x64xbf16>, vector<64x64xbf16>, vector<16x64xf32> -> vector<16x64xf32>
    %20 = arith.addf %18, %19 : vector<16x64xf32>
    %c0_15 = arith.constant 0 : index
    %c0_16 = arith.constant 0 : index
    %21 = vector.load %arg9[%c0_15, %c0_16] : memref<16x64xf32, #tpu.memory_space<vmem>>, vector<16x64xf32>
    tpu.vector_store %arg9[%c0_15, %c0_16], %20 {strides = array<i32>} : memref<16x64xf32, #tpu.memory_space<vmem>>, vector<16x64xf32>,
    %c0_i32_17 = arith.constant 0 : i32
    %22 = arith.cmpi eq, %arg2, %c0_i32_17 : i32
    %23 = arith.extui %22 : i1 to i32
    %c0_i32_18 = arith.constant 0 : i32
    %24 = arith.cmpi ne, %23, %c0_i32_18 : i32
    scf.if %24 {
      %c0_19 = arith.constant 0 : index
      %c0_20 = arith.constant 0 : index
      %25 = memref.load %arg7[%c0_19, %c0_20] : memref<1x1xf32, #tpu.memory_space<smem>>
      %c0_21 = arith.constant 0 : index
      %c0_22 = arith.constant 0 : index
      %26 = vector.load %arg9[%c0_21, %c0_22] : memref<16x64xf32, #tpu.memory_space<vmem>>, vector<16x64xf32>
      %27 = vector.broadcast %25 : f32 to vector<16x64xf32>
      %28 = arith.mulf %27, %26 : vector<16x64xf32>
      %c0_23 = arith.constant 0 : index
      %c0_24 = arith.constant 0 : index
      %c0_25 = arith.constant 0 : index
      %29 = vector.load %arg3[%c0_23, %c0_24, %c0_25] : memref<1x16x64xf32, #tpu.memory_space<vmem>>, vector<1x16x64xf32>
      %30 = vector.shape_cast %29 : vector<1x16x64xf32> to vector<16x64xf32>
      %31 = arith.addf %28, %30 : vector<16x64xf32>
      %c0_26 = arith.constant 0 : index
      %c0_27 = arith.constant 0 : index
      %c0_28 = arith.constant 0 : index
      %32 = vector.load %arg8[%c0_26, %c0_27, %c0_28] : memref<1x16x64xf32, #tpu.memory_space<vmem>>, vector<1x16x64xf32>
      %33 = vector.shape_cast %32 : vector<1x16x64xf32> to vector<16x64xf32>
      %34 = vector.shape_cast %31 : vector<16x64xf32> to vector<1x16x64xf32>
      tpu.vector_store %arg8[%c0_26, %c0_27, %c0_28], %34 {strides = array<i32>} : memref<1x16x64xf32, #tpu.memory_space<vmem>>, vector<1x16x64xf32>,
    } else {
    }
    return
  }
  func.func @transform_0(%arg0: i32, %arg1: i32, %arg2: i32) -> (i32, i32, i32) {
    %c0_i32 = arith.constant 0 : i32
    %c0_i32_0 = arith.constant 0 : i32
    return %arg0, %c0_i32, %arg1 : i32, i32, i32
  }
  func.func @transform_1(%arg0: i32, %arg1: i32, %arg2: i32) -> (i32, i32, i32) {
    %c0_i32 = arith.constant 0 : i32
    %c0_i32_0 = arith.constant 0 : i32
    return %arg0, %c0_i32, %arg1 : i32, i32, i32
  }
  func.func @transform_2(%arg0: i32, %arg1: i32, %arg2: i32) -> (i32, i32, i32) {
    %c0_i32 = arith.constant 0 : i32
    %c0_i32_0 = arith.constant 0 : i32
    return %arg0, %c0_i32, %arg2 : i32, i32, i32
  }
  func.func @transform_3(%arg0: i32, %arg1: i32, %arg2: i32) -> (i32, i32, i32) {
    %c0_i32 = arith.constant 0 : i32
    %c0_i32_0 = arith.constant 0 : i32
    return %arg0, %c0_i32, %arg2 : i32, i32, i32
  }
  func.func @transform_4(%arg0: i32, %arg1: i32, %arg2: i32) -> (i32, i32) {
    %c0_i32 = arith.constant 0 : i32
    %c0_i32_0 = arith.constant 0 : i32
    %c0_i32_1 = arith.constant 0 : i32
    return %c0_i32, %c0_i32_0 : i32, i32
  }
  func.func @transform_5(%arg0: i32, %arg1: i32, %arg2: i32) -> (i32, i32, i32) {
    %c0_i32 = arith.constant 0 : i32
    %c0_i32_0 = arith.constant 0 : i32
    return %arg0, %c0_i32, %arg1 : i32, i32, i32
  }
}

</mosaic_0001>

<bundles_post_ra>
// kernel: self_attn_forward.1
= control target key start
LH: loop header
LB: loop body
LE: loop exit
PB: predicated region body
PF: predicated region fallthrough
CT: control target
= control target key end

     0   :  { %s848_s20 = smov 0   ;;  %s850_s21 = smov 0   ;;  %s913_s0 = inlined_call_operand.vmem [shape: f32[2,16,64], index: 0, kind: input, shape index: {}, may-alias: {0,5}]   ;;  %s914_s1 = inlined_call_operand.vmem [shape: bf16[2,2,64], index: 1, kind: input, shape index: {}]   ;;  %s915_s2 = inlined_call_operand.vmem [shape: bf16[2,2,64], index: 2, kind: input, shape index: {}]   ;;  %s916_s3 = inlined_call_operand.vmem [shape: bf16[2,16,64], index: 3, kind: input, shape index: {}]   ;;  %s917_s4 = inlined_call_operand.<no memory space> [shape: f32[1,1], index: 4, kind: input, shape index: {}]   ;;  %s918_s5 = inlined_call_operand.vmem [shape: f32[2,16,64], index: 5, kind: output, shape index: {}, may-alias: {0,5}]  }
   0x1   :  { %10 = sst [smem:[#allocation3]] %s917_s4  ;;  %s852_s22 = smov 0  }
   0x2 LB: > { %s35_s4 = sadd.s32 1, %s807_s21  ;;  %p694_p0 = scmp.ge.s32.totalorder %s811_s22, 1  ;;  %s811_s22 = sphi %s852_s22, %s16_s22   ;;  %s807_s21 = sphi %s850_s21, %s920_s21   ;;  %s803_s20 = sphi %s848_s20, %s919_s20  }
   0x3   : > { %p37_p1 = scmp.ge.s32.totalorder %s35_s4, 2  ;;  %p255_p2 = scmp.lt.s32.totalorder %s811_s22, 3 }
   0x5   : > { %s922_s4 = smov (%p37_p1, %s35_s4), 0  ;;  %p256_p3 = pnand %p694_p0, %p255_p2 }
   0x6   : > { %p309_p4 = scmp.lt.s32.totalorder (!%p256_p3), %s803_s20, 1  ;;  %vm386_vm0 = vcmask (!%p256_p3), 1040384   ;;  %vm373_vm1 = vcmask (!%p256_p3), 15360   ;;  %v813_v7 = vmov (!%p256_p3), 0.0   ;;  %vm350_vm2 = vcmask (!%p256_p3), 523264   ;;  %s550_s8 = sld [smem:[#allocation3]] (!%p256_p3) }
   0x7   : > { %259 = sbr.rel (%p256_p3) target bundleno = 602 (0x25a), region = 40  ;;  %732 = vmatprep.subr.bf16.mxu1 (!%p256_p3), %v813_v7  ;;  %vm814_vm3 = vmmov (!%p256_p3), 0   ;;  %351 = vst.msk [vmem:[#allocation2] sm:$0xff] (!%p256_p3), %vm350_vm2, %v813_v7  ;;  %352 = vst.msk [vmem:[#allocation2 + $0x8] sm:$0xff] (!%p256_p3), %vm350_vm2, %v813_v7 }
   0x8   : > { %740 = vmatprep.mubr.msk.bf16.mxu1 (!%p256_p3), %vm814_vm3, %v813_v7 }
   0xc   : > { %v553_v61 = vstv (!%p256_p3), %s550_s8 }
   0xe   : > { %s924_s20 = smov (!%p309_p4, %s803_s20), 1  ;;  %v491_v53 = vld [vmem:[#allocation2] sm:$0xff]  ;;  %v492_v55 = vld [vmem:[#allocation2 + $0x8] sm:$0xff] }
   0xf   : > { %s328_s25 = scalar_lea.vmem %s915_s2, %s924_s20  ;;  %s322_s28 = scalar_lea.vmem %s914_s1, %s924_s20 }
  0x10   : > { %v354_v0 = vld [vmem:[%s328_s25] sm:$0x1]  ;;  %s710_s29 = sshll.u32 %s924_s20, 3  ;;  %s709_s9 = sshll.u32 %s924_s20, 4 }
  0x11   : > { %357 = vxpose.xlu0.c.b16.start.end [1/1] (short) (narrow) %v354_v0, 64  ;;  %v353_v1 = vld [vmem:[%s322_s28] sm:$0x1]  ;;  %s881_s7 = scalar_lea.vmem %s916_s3, %s710_s29  ;;  %s316_s12 = scalar_lea.vmem %s913_s0, %s709_s9 }
  0x12   : > { %744 = vmatprep.subr.msk.bf16.mxu0 %vm386_vm0, %v353_v1  ;;  %v388_v2 = vsel %vm386_vm0, %v353_v1, 0  ;;  %v772_v52 = vld [vmem:[%s881_s7] sm:$0xff]   ;;  %s344_s15 = scalar_lea.vmem %s918_s5, %s709_s9  ;;  %v557_v1 = vld [vmem:[%s316_s12 + $0x8] sm:$0xff] }
  0x13   : > { %723 = vmatpush3.bf16.msra.mxu0 %v388_v2  ;;  %v556_v62 = vld [vmem:[%s316_s12] sm:$0xff] }
  0x77   : > { %v365_v3 = vpop.trf.xlu0 }
  0x78   : > { %724 = vmatprep.mubr.msk.bf16.mxu0 %vm373_vm1, %v365_v3 }
  0x7b   : > { %v366_v4 = vpop.trf.xlu0 }
  0x7c   : > { %725 = vmatmul.mubr.msk.bf16.vlgmr.msra.gmra.mrb[0].mxu0 %vm373_vm1, %v366_v4 }
  0x7f   : > { %v367_v5 = vpop.trf.xlu0 }
  0x80   : > { %728 = vmatprep.mubr.msk.bf16.mxu0 %vm373_vm1, %v367_v5 }
  0x83   : > { %v368_v6 = vpop.trf.xlu0 }
  0x84   : > { %729 = vmatmul.mubr.msk.bf16.gmra.mrb[4].mxu0 %vm373_vm1, %v368_v6 }
 0x14f   : > { %v726_v8 = vpop.f32.mrb[0].mxu0 }
 0x150   : > { %v457_v9 = vmul.f32 0.5, %v726_v8  ;;  %v424_v10 = vpop.f32.mrb[1].mxu0 }
 0x151   : > { %v455_v11 = vmul.f32 0.5, %v424_v10  ;;  %v727_v12 = vpop.f32.mrb[2].mxu0 }
 0x152   : > { %773 = vtanh.f32 %v457_v9  ;;  %v458_v13 = vmul.f32 0.5, %v727_v12  ;;  %v427_v14 = vpop.f32.mrb[3].mxu0 }
 0x153   : > { %775 = vtanh.f32 %v455_v11  ;;  %v456_v15 = vmul.f32 0.5, %v427_v14 }
 0x154   : > { %777 = vtanh.f32 %v458_v13 }
 0x155   : > { %779 = vtanh.f32 %v456_v15 }
 0x157   : > { %v730_v16 = vpop.f32.mrb[4].mxu0 }
 0x158   : > { %v461_v17 = vmul.f32 0.5, %v730_v16  ;;  %v440_v18 = vpop.f32.mrb[5].mxu0 }
 0x159   : > { %v459_v19 = vmul.f32 0.5, %v440_v18  ;;  %v731_v20 = vpop.f32.mrb[6].mxu0 }
 0x15a   : > { %781 = vtanh.f32 %v461_v17  ;;  %v462_v21 = vmul.f32 0.5, %v731_v20  ;;  %v443_v22 = vpop.f32.mrb[7].mxu0 }
 0x15b   : > { %783 = vtanh.f32 %v459_v19  ;;  %v460_v23 = vmul.f32 0.5, %v443_v22 }
 0x15c   : > { %v774_v24 = vpop.eup %773  ;;  %785 = vtanh.f32 %v462_v21 }
 0x15d   : > { %v776_v25 = vpop.eup %775  ;;  %v473_v26 = vmul.f32 0.5, %v774_v24  ;;  %787 = vtanh.f32 %v460_v23 }
 0x15e   : > { %v778_v27 = vpop.eup %777  ;;  %v471_v28 = vmul.f32 0.5, %v776_v25 }
 0x15f   : > { %v780_v29 = vpop.eup %779  ;;  %v474_v30 = vmul.f32 0.5, %v778_v27  ;;  %v481_v32 = vadd.f32 0.5, %v473_v26 }
 0x160   : > { %v472_v31 = vmul.f32 0.5, %v780_v29  ;;  %v479_v34 = vadd.f32 0.5, %v471_v28 }
 0x161   : > { %v482_v33 = vadd.f32 0.5, %v474_v30 }
 0x162   : > { %v480_v35 = vadd.f32 0.5, %v472_v31 }
 0x163   : > { %v488_v36 = vpack.c.bf16 %v482_v33, %v481_v32 }
 0x164   : > { %v782_v37 = vpop.eup %781  ;;  %v487_v38 = vpack.c.bf16 %v480_v35, %v479_v34 }
 0x165   : > { %v784_v39 = vpop.eup %783  ;;  %v477_v40 = vmul.f32 0.5, %v782_v37 }
 0x166   : > { %v786_v41 = vpop.eup %785  ;;  %v475_v42 = vmul.f32 0.5, %v784_v39  ;;  %733 = vmatpush3.bf16.msra.mxu1 %v487_v38 }
 0x167   : > { %v788_v43 = vpop.eup %787  ;;  %v478_v44 = vmul.f32 0.5, %v786_v41  ;;  %734 = vmatprep.subr.bf16.mxu1 %v813_v7  ;;  %v485_v46 = vadd.f32 0.5, %v477_v40 }
 0x168   : > { %v476_v45 = vmul.f32 0.5, %v788_v43  ;;  %v483_v48 = vadd.f32 0.5, %v475_v42 }
 0x169   : > { %v486_v47 = vadd.f32 0.5, %v478_v44 }
 0x16a   : > { %v484_v49 = vadd.f32 0.5, %v476_v45  ;;  %735 = vmatpush3.bf16.msra.mxu1 %v488_v36 }
 0x16b   : > { %736 = vmatprep.subr.bf16.mxu1 %v813_v7  ;;  %v490_v50 = vpack.c.bf16 %v486_v47, %v485_v46 }
 0x16c   : > { %v489_v51 = vpack.c.bf16 %v484_v49, %v483_v48 }
 0x16e   : > { %737 = vmatpush3.bf16.msra.mxu1 %v489_v51 }
 0x16f   : > { %738 = vmatprep.subr.bf16.mxu1 %v813_v7 }
 0x172   : > { %739 = vmatpush3.bf16.msra.mxu1 %v490_v50 }
 0x175   : > { %741 = vmatmul.mubr.msk.bf16.vlgmr.msra.gmra.mrb[0].mxu1 %vm350_vm2, %v772_v52 }
 0x248   : > { %v536_v54 = vpop.f32.mrb[0].mxu1 }
 0x249   : > { %v543_v56 = vadd.f32 %v536_v54, %v491_v53  ;;  %v742_v57 = vpop.f32.mrb[1].mxu1 }
 0x24a   : > { %v539_v58 = vpop.f32.mrb[2].mxu1 }
 0x24b   : > { %545 = vst.msk [vmem:[#allocation2] sm:$0xff] %vm350_vm2, %v543_v56  ;;  %v544_v59 = vadd.f32 %v539_v58, %v492_v55  ;;  %v743_v60 = vpop.f32.mrb[3].mxu1 }
 0x24d   : > { %546 = vst.msk [vmem:[#allocation2 + $0x8] sm:$0xff] %vm350_vm2, %v544_v59 }
 0x252   : > { %v551_v63 = vld [vmem:[#allocation2] sm:$0xff] }
 0x253   : > { %v554_v0 = vmul.f32 %v553_v61, %v551_v63 }
 0x254   : > { %v552_v2 = vld [vmem:[#allocation2 + $0x8] sm:$0xff] }
 0x255   : > { %v558_v3 = vadd.f32 %v556_v62, %v554_v0  ;;  %v555_v4 = vmul.f32 %v553_v61, %v552_v2 }
 0x257   : > { %560 = vst.msk [vmem:[%s344_s15] sm:$0xff] %vm350_vm2, %v558_v3  ;;  %v559_v5 = vadd.f32 %v557_v1, %v555_v4 }
 0x259   : > { %561 = vst.msk [vmem:[%s344_s15 + $0x8] sm:$0xff] %vm350_vm2, %v559_v5 }
 0x25a PF: > { %s16_s22 = sadd.s32 1, %s811_s22   ;;  %s919_s20 = smov %s807_s21 }
 0x25b   : > { %p13_p5 = scmp.ge.s32.totalorder %s16_s22, 4   ;;  %s920_s21 = smov %s922_s4 }
 0x25d   :  { %15 = sbr.rel (!%p13_p5) target bundleno = 2 (0x2), region = 87 }

</bundles_post_ra>
